<compile_context>
chip_gen: v7x
topology: tpu7x:2x2x1
jax: 0.10.0
libtpu: 0.0.40
codegen_flags: <defaults>
</compile_context>

<pallas_src>
import jax
import jax.numpy as jnp
from jax.experimental import pallas as pl
from jax.experimental.pallas import tpu as pltpu

HIDDEN = 100        # logical hidden width (matches nn.Linear(*, 100))
HIDDEN_PAD = 128    # lane-dense padded hidden width (one vreg lane group)
MAX_TILE_B = 2048   # batch tile cap (VMEM-safe on every generation's default)
SMALL_B = 256       # below this, run a single full-array block


def cnet_kernel(s_ref, a_ref, ws_ref, wa_ref, b_ref, wo_ref, out_ref):
    # Input layer: two MXU matmuls with bf16 operands, f32 accumulation.
    h = jnp.dot(s_ref[...].astype(jnp.bfloat16), ws_ref[...],
                preferred_element_type=jnp.float32)
    h = h + jnp.dot(a_ref[...].astype(jnp.bfloat16), wa_ref[...],
                    preferred_element_type=jnp.float32)
    # net = relu(h + (bs + ba))  -- f32 epilogue; lane 100 of b is a 1.0
    # sentinel that (with wo lane 100 = bo) folds the output bias in.
    net = jnp.maximum(h + b_ref[...], 0.0)                  # (tile_b, 128)
    # Output layer: VPU multiply + XLU lane reduce (N=1, avoid MXU drain).
    q = jnp.sum(net * wo_ref[...], axis=-1, keepdims=True)  # (tile_b, 1)
    out_ref[...] = q.astype(out_ref.dtype)


def prepare_params(params):
    """Fuse + zero-pad raw CNet params for the kernel.

    Raw params are stored transposed vs nn.Linear, i.e. (in_dim, out_dim):
      ws (s_dim, 100), bs (1, 100), wa (a_dim, 100), ba (1, 100),
      wo (100, 1),  bo (1, 1)
    Returns:
      ws_p (s_dim, 128) bf16, wa_p (a_dim, 128) bf16,
      b_in (1, 128) f32 (bs + ba, lane 100 = 1.0 sentinel),
      wo_row (1, 128) f32 (wo^T, lane 100 = bo).
    """
    ws, bs, wa, ba, wo, bo = params
    h = ws.shape[1]
    assert h < HIDDEN_PAD, "need a spare padded lane to fold bo"
    pad = HIDDEN_PAD - h
    ws_p = jnp.pad(ws, ((0, 0), (0, pad))).astype(jnp.bfloat16)
    wa_p = jnp.pad(wa, ((0, 0), (0, pad))).astype(jnp.bfloat16)
    b_in = (jnp.zeros((1, HIDDEN_PAD), jnp.float32)
            .at[:, :h].set(bs + ba)
            .at[0, h].set(1.0))                 # relu(0 + 1.0) = 1.0
    wo_row = (jnp.zeros((1, HIDDEN_PAD), jnp.float32)
              .at[:, :h].set(wo[:, 0])
              .at[0, h].set(bo[0, 0]))          # 1.0 * bo = bo
    return ws_p, wa_p, b_in, wo_row


def _tile_plan(batch):
    """Pick (tile_b, n_tiles). Even, balanced tile count for v7x megacore."""
    if batch <= SMALL_B:
        return batch, 1
    target_tiles = 2 * max(1, -(-batch // (2 * MAX_TILE_B)))   # even, >= 2
    tile_b = -(-batch // target_tiles)
    tile_b = min(MAX_TILE_B, ((tile_b + 7) // 8) * 8)          # (8,128) rule
    n_tiles = -(-batch // tile_b)                              # actual grid
    return tile_b, n_tiles


def cnet_forward(s, a, fused_params):
    """s: (B, s_dim) f32, a: (B, a_dim) f32 -> (B, 1) f32."""
    ws_p, wa_p, b_in, wo_row = fused_params
    batch, s_dim = s.shape
    a_dim = a.shape[1]
    tile_b, n_tiles = _tile_plan(batch)

    resident = lambda r, c: pl.BlockSpec((r, c), lambda i: (0, 0))

    q = pl.pallas_call(
        cnet_kernel,
        out_shape=jax.ShapeDtypeStruct((batch, 1), jnp.float32),
        grid_spec=pltpu.PrefetchScalarGridSpec(
            num_scalar_prefetch=0,
            grid=(n_tiles,),
            in_specs=[
                pl.BlockSpec((tile_b, s_dim), lambda i: (i, 0)),  # s tile
                pl.BlockSpec((tile_b, a_dim), lambda i: (i, 0)),  # a tile
                resident(s_dim, HIDDEN_PAD),                      # Ws (bf16)
                resident(a_dim, HIDDEN_PAD),                      # Wa (bf16)
                resident(1, HIDDEN_PAD),                          # bs+ba (+1 lane)
                resident(1, HIDDEN_PAD),                          # wo row (+bo lane)
            ],
            out_specs=pl.BlockSpec((tile_b, 1), lambda i: (i, 0)),
        ),
        compiler_params=pltpu.CompilerParams(
            dimension_semantics=("parallel",),   # v7x: split batch over 2 TCs
        ),
        cost_estimate=pl.CostEstimate(
            flops=2 * batch * (s_dim + a_dim + 1) * HIDDEN_PAD,
            transcendentals=0,
            bytes_accessed=4 * batch * (s_dim + a_dim + 1)
                           + 2 * (s_dim + a_dim) * HIDDEN_PAD
                           + 2 * 4 * HIDDEN_PAD,
        ),
    )(s, a, ws_p, wa_p, b_in, wo_row)
    return q


def init_cnet_params(key, s_dim, a_dim, hidden=HIDDEN):
    """Synthetic init mirroring CNet.__init__ shapes.

    nn.Linear(in, out) weight is (out, in); we store the transpose (in, out).
    Weights ~ N(0, 0.1) as in the reference; biases use PyTorch's default
    U(-1/sqrt(fan_in), 1/sqrt(fan_in)).
    """
    k = jax.random.split(key, 6)
    ws = 0.1 * jax.random.normal(k[0], (s_dim, hidden), jnp.float32)
    wa = 0.1 * jax.random.normal(k[1], (a_dim, hidden), jnp.float32)
    wo = 0.1 * jax.random.normal(k[2], (hidden, 1), jnp.float32)
    bs = jax.random.uniform(k[3], (1, hidden), jnp.float32,
                            -1.0 / jnp.sqrt(s_dim), 1.0 / jnp.sqrt(s_dim))
    ba = jax.random.uniform(k[4], (1, hidden), jnp.float32,
                            -1.0 / jnp.sqrt(a_dim), 1.0 / jnp.sqrt(a_dim))
    bo = jax.random.uniform(k[5], (1, 1), jnp.float32,
                            -1.0 / jnp.sqrt(hidden), 1.0 / jnp.sqrt(hidden))
    return ws, bs, wa, ba, wo, bo


def cnet_reference(s, a, params):
    ws, bs, wa, ba, wo, bo = params
    net = jnp.maximum(s @ ws + bs + a @ wa + ba, 0.0)
    return net @ wo + bo


if __name__ == "__main__":
    key = jax.random.PRNGKey(0)
    s_dim, a_dim = 16, 4

    k_s, k_a, k_p = jax.random.split(key, 3)
    params = init_cnet_params(k_p, s_dim, a_dim)
    fused = prepare_params(params)

    # Small-batch check (single full-array block path).
    B = 2
    s = jax.random.normal(k_s, (B, s_dim), jnp.float32)
    a = jax.random.normal(k_a, (B, a_dim), jnp.float32)
    q = jax.block_until_ready(cnet_forward(s, a, fused))
    q_ref = cnet_reference(s, a, params)
    assert q.shape == (B, 1)
    assert jnp.allclose(q, q_ref, atol=2e-2, rtol=2e-2), (q, q_ref)

    # Larger, non-multiple batch check (even-tiled grid + clipped last block).
    B2 = 1037
    s2 = jax.random.normal(jax.random.PRNGKey(1), (B2, s_dim), jnp.float32)
    a2 = jax.random.normal(jax.random.PRNGKey(2), (B2, a_dim), jnp.float32)
    q2 = jax.block_until_ready(cnet_forward(s2, a2, fused))
    q2_ref = cnet_reference(s2, a2, params)
    assert q2.shape == (B2, 1)
    assert jnp.allclose(q2, q2_ref, atol=2e-2, rtol=2e-2)

    print("KERNEL_OK")
</pallas_src>

<mosaic_0001>
module attributes {stable_mosaic.version = 11 : i64} {
  func.func @cnet_kernel(%arg0: i32, %arg1: memref<2x16xf32, #tpu.memory_space<vmem>>, %arg2: memref<2x4xf32, #tpu.memory_space<vmem>>, %arg3: memref<16x128xbf16, #tpu.memory_space<vmem>>, %arg4: memref<4x128xbf16, #tpu.memory_space<vmem>>, %arg5: memref<1x128xf32, #tpu.memory_space<vmem>>, %arg6: memref<1x128xf32, #tpu.memory_space<vmem>>, %arg7: memref<2x1xf32, #tpu.memory_space<vmem>>) attributes {dimension_semantics = [#tpu.dimension_semantics<parallel>], iteration_bounds = array<i64: 1>, scalar_prefetch = 0 : i64, scratch_operands = 0 : i64, tpu.core_type = #tpu.core_type<tc>, window_params = [{transform_indices = @transform_0, window_bounds = array<i64: 2, 16>}, {transform_indices = @transform_1, window_bounds = array<i64: 2, 4>}, {pipeline_mode = #tpu.pipeline_mode<synchronous>, transform_indices = @transform_2, window_bounds = array<i64: 16, 128>}, {pipeline_mode = #tpu.pipeline_mode<synchronous>, transform_indices = @transform_3, window_bounds = array<i64: 4, 128>}, {pipeline_mode = #tpu.pipeline_mode<synchronous>, transform_indices = @transform_4, window_bounds = array<i64: 1, 128>}, {pipeline_mode = #tpu.pipeline_mode<synchronous>, transform_indices = @transform_5, window_bounds = array<i64: 1, 128>}, {transform_indices = @transform_6, window_bounds = array<i64: 2, 1>}]} {
    %c0 = arith.constant 0 : index
    %c0_0 = arith.constant 0 : index
    %0 = vector.load %arg1[%c0, %c0_0] : memref<2x16xf32, #tpu.memory_space<vmem>>, vector<2x16xf32>
    %1 = arith.truncf %0 : vector<2x16xf32> to vector<2x16xbf16>
    %c0_1 = arith.constant 0 : index
    %c0_2 = arith.constant 0 : index
    %2 = vector.load %arg3[%c0_1, %c0_2] : memref<16x128xbf16, #tpu.memory_space<vmem>>, vector<16x128xbf16>
    %cst = arith.constant dense<0.000000e+00> : vector<2x128xf32>
    %3 = tpu.matmul %1, %2, %cst {dimension_numbers = #tpu.dot_dimension_numbers<[1], [0], [0], [1], [0, 0, 1, 1], [], []>} : vector<2x16xbf16>, vector<16x128xbf16>, vector<2x128xf32> -> vector<2x128xf32>
    %c0_3 = arith.constant 0 : index
    %c0_4 = arith.constant 0 : index
    %4 = vector.load %arg2[%c0_3, %c0_4] : memref<2x4xf32, #tpu.memory_space<vmem>>, vector<2x4xf32>
    %5 = arith.truncf %4 : vector<2x4xf32> to vector<2x4xbf16>
    %c0_5 = arith.constant 0 : index
    %c0_6 = arith.constant 0 : index
    %6 = vector.load %arg4[%c0_5, %c0_6] : memref<4x128xbf16, #tpu.memory_space<vmem>>, vector<4x128xbf16>
    %cst_7 = arith.constant dense<0.000000e+00> : vector<2x128xf32>
    %7 = tpu.matmul %5, %6, %cst_7 {dimension_numbers = #tpu.dot_dimension_numbers<[1], [0], [0], [1], [0, 0, 1, 1], [], []>} : vector<2x4xbf16>, vector<4x128xbf16>, vector<2x128xf32> -> vector<2x128xf32>
    %8 = arith.addf %3, %7 : vector<2x128xf32>
    %c0_8 = arith.constant 0 : index
    %c0_9 = arith.constant 0 : index
    %9 = vector.load %arg5[%c0_8, %c0_9] : memref<1x128xf32, #tpu.memory_space<vmem>>, vector<1x128xf32>
    %10 = vector.broadcast %9 : vector<1x128xf32> to vector<2x128xf32>
    %11 = arith.addf %8, %10 : vector<2x128xf32>
    %cst_10 = arith.constant 0.000000e+00 : f32
    %12 = vector.broadcast %cst_10 : f32 to vector<2x128xf32>
    %13 = arith.maximumf %11, %12 : vector<2x128xf32>
    %c0_11 = arith.constant 0 : index
    %c0_12 = arith.constant 0 : index
    %14 = vector.load %arg6[%c0_11, %c0_12] : memref<1x128xf32, #tpu.memory_space<vmem>>, vector<1x128xf32>
    %15 = vector.broadcast %14 : vector<1x128xf32> to vector<2x128xf32>
    %16 = arith.mulf %13, %15 : vector<2x128xf32>
    %cst_13 = arith.constant dense<0.000000e+00> : vector<2xf32>
    %17 = vector.multi_reduction <add>, %16, %cst_13 [1] : vector<2x128xf32> to vector<2xf32>
    %18 = vector.shape_cast %17 : vector<2xf32> to vector<2x1xf32>
    %c0_14 = arith.constant 0 : index
    %c0_15 = arith.constant 0 : index
    %19 = vector.load %arg7[%c0_14, %c0_15] : memref<2x1xf32, #tpu.memory_space<vmem>>, vector<2x1xf32>
    tpu.vector_store %arg7[%c0_14, %c0_15], %18 {strides = array<i32>} : memref<2x1xf32, #tpu.memory_space<vmem>>, vector<2x1xf32>,
    return
  }
  func.func @transform_0(%arg0: i32) -> (i32, i32) {
    %c0_i32 = arith.constant 0 : i32
    %c0_i32_0 = arith.constant 0 : i32
    return %arg0, %c0_i32 : i32, i32
  }
  func.func @transform_1(%arg0: i32) -> (i32, i32) {
    %c0_i32 = arith.constant 0 : i32
    %c0_i32_0 = arith.constant 0 : i32
    return %arg0, %c0_i32 : i32, i32
  }
  func.func @transform_2(%arg0: i32) -> (i32, i32) {
    %c0_i32 = arith.constant 0 : i32
    %c0_i32_0 = arith.constant 0 : i32
    %c0_i32_1 = arith.constant 0 : i32
    return %c0_i32, %c0_i32_0 : i32, i32
  }
  func.func @transform_3(%arg0: i32) -> (i32, i32) {
    %c0_i32 = arith.constant 0 : i32
    %c0_i32_0 = arith.constant 0 : i32
    %c0_i32_1 = arith.constant 0 : i32
    return %c0_i32, %c0_i32_0 : i32, i32
  }
  func.func @transform_4(%arg0: i32) -> (i32, i32) {
    %c0_i32 = arith.constant 0 : i32
    %c0_i32_0 = arith.constant 0 : i32
    %c0_i32_1 = arith.constant 0 : i32
    return %c0_i32, %c0_i32_0 : i32, i32
  }
  func.func @transform_5(%arg0: i32) -> (i32, i32) {
    %c0_i32 = arith.constant 0 : i32
    %c0_i32_0 = arith.constant 0 : i32
    %c0_i32_1 = arith.constant 0 : i32
    return %c0_i32, %c0_i32_0 : i32, i32
  }
  func.func @transform_6(%arg0: i32) -> (i32, i32) {
    %c0_i32 = arith.constant 0 : i32
    %c0_i32_0 = arith.constant 0 : i32
    return %arg0, %c0_i32 : i32, i32
  }
}

</mosaic_0001>

<bundles_post_ra>
// kernel: tpu_custom_call.1
= control target key start
LH: loop header
LB: loop body
LE: loop exit
PB: predicated region body
PF: predicated region fallthrough
CT: control target
= control target key end

     0   :  { %11 = vsyncpa [#allocation3], 0  ;;  %s348_s0 = inlined_call_operand.hbm [shape: f32[2,16], index: 0, kind: input, shape index: {}]   ;;  %s349_s1 = inlined_call_operand.vmem [shape: f32[2,4], index: 1, kind: input, shape index: {}]   ;;  %s350_s2 = inlined_call_operand.hbm [shape: bf16[16,128], index: 2, kind: input, shape index: {}]   ;;  %s351_s3 = inlined_call_operand.vmem [shape: bf16[4,128], index: 3, kind: input, shape index: {}]   ;;  %s352_s4 = inlined_call_operand.vmem [shape: f32[1,128], index: 4, kind: input, shape index: {}]   ;;  %s353_s5 = inlined_call_operand.vmem [shape: f32[1,128], index: 5, kind: input, shape index: {}]   ;;  %s354_s6 = inlined_call_operand.vmem [shape: f32[2,1], index: 6, kind: output, shape index: {}]  }
   0x1   :  { %12 = vsyncpa [#allocation5], 0  ;;  %s259_s21 = smov [#allocation2]   ;;  %s260_s23 = smov [#allocation4]  }
   0x2   :  { %s19_s22 = sshll.u32 %s259_s21, 4  ;;  %s30_s24 = sshll.u32 %s260_s23, 4  ;;  %s20_s22 = int_to_ptr.vmem [resolvable:$true] %s19_s22  ;;  %s300_s24 = int_to_ptr.vmem [resolvable:$true] %s30_s24 }
   0x3   :  { %s211_s27 = scalar_lea.hbm %s348_s0, 32 }
   0x4   :  { %p212_p0 = scmp.ne.s32.totalorder %s348_s0, %s211_s27  ;;  %p215_p1 = scmp.lt.u32.totalorder %s211_s27, %s348_s0 }
   0x6   :  { %p217_p2 = pnand %p215_p1, %p212_p0 }
   0x8   :  { %220 = shalt.err (!%p217_p2)
}
   0x9   :  { %s221_s8 = scalar_lea.vmem %s20_s22, 32  ;;  %p226_p4 = scmp.lt.s32.totalorder %s20_s22, %s20_s22 }
   0xa   :  { %p222_p3 = scmp.ne.s32.totalorder %s20_s22, %s221_s8  ;;  %p227_p5 = scmp.lt.s32.totalorder %s221_s8, %s221_s8 }
   0xc   :  { %p228_p6 = por %p227_p5, %p226_p4 }
   0xe   :  { %p229_p7 = pnand %p228_p6, %p222_p3 }
  0x10   :  { %232 = shalt.err (!%p229_p7)
}
  0x11   :  { %22 = dma.hbm_to_vmem [thread:$0]  %s348_s0, 32, %s20_s22, [#allocation3]  }
  0x12   :  { %s233_s13 = scalar_lea.hbm %s350_s2, 128 }
  0x13   :  { %p234_p8 = scmp.ne.s32.totalorder %s350_s2, %s233_s13  ;;  %p237_p9 = scmp.lt.u32.totalorder %s233_s13, %s350_s2 }
  0x15   :  { %p239_p10 = pnand %p237_p9, %p234_p8 }
  0x17   :  { %242 = shalt.err (!%p239_p10)
}
  0x18   :  { %s243_s18 = scalar_lea.vmem %s300_s24, 128  ;;  %p248_p12 = scmp.lt.s32.totalorder %s300_s24, %s300_s24 }
  0x19   :  { %p244_p11 = scmp.ne.s32.totalorder %s300_s24, %s243_s18  ;;  %p249_p13 = scmp.lt.s32.totalorder %s243_s18, %s243_s18 }
  0x1b   :  { %p250_p0 = por %p249_p13, %p248_p12 }
  0x1d   :  { %p251_p1 = pnand %p250_p0, %p244_p11 }
  0x1f   :  { %254 = shalt.err (!%p251_p1)
}
  0x20   :  { %s261_s0 = smov 64   ;;  %s262_s19 = smov 4  }
  0x21   :  { %36 = dma.hbm_to_vmem [thread:$0]  %s350_s2, 128, %s300_s24, [#allocation5], %s261_s0, %s261_s0, %s262_s19  }
  0x22   :  { %255 = dma.done.wait [#allocation3], 32  }
  0x23   :  { %256 = vsyncadd [#allocation3], 4294967264 }
  0x24   :  { %257 = dma.done.wait [#allocation5], 128  }
  0x25   :  { %258 = vsyncadd [#allocation5], 4294967168  ;;  %v263_v0 = vmov 0.0   ;;  %vm264_vm0 = vmmov 0   ;;  %vm61_vm1 = vcmask 1041408   ;;  %v210_v3 = vld [vmem:[#allocation4] sm:$0xff]  }
  0x26   :  { %192 = vmatprep.subr.bf16.mxu0 %v263_v0  ;;  %198 = vmatprep.subr.bf16.mxu1 %v263_v0  ;;  %v56_v1 = vld [vmem:[%s351_s3] sm:$0x3]  ;;  %vm57_vm2 = vcmask 31744   ;;  %vm111_vm3 = vcmask 130048   ;;  %vm175_vm4 = vcmask 1024  }
  0x27   :  { %194 = vmatprep.mubr.msk.bf16.mxu0 %vm264_vm0, %v263_v0  ;;  %200 = vmatprep.mubr.msk.bf16.mxu1 %vm264_vm0, %v263_v0  ;;  %v63_v2 = vsel %vm61_vm1, %v56_v1, 0  ;;  %v54_v4 = vld [vmem:[%s349_s1] sm:$0x3] }
  0x28   :  { %v50_v5 = vld [vmem:[#allocation2] sm:$0x3]  ;;  %193 = vmatpush3.bf16.msra.mxu0 %v63_v2  ;;  %v55_v6 = vpack.c.bf16 %v54_v4, %v54_v4  ;;  %199 = vmatpush3.bf16.msra.mxu1 %v210_v3 }
  0x29   :  { %v51_v7 = vpack.c.bf16 %v50_v5, %v50_v5  ;;  %v186_v11 = vld [vmem:[%s352_s4] ss:$0 sm:$0xff] }
  0x2a   :  { %v187_v19 = vld [vmem:[%s353_s5] ss:$0 sm:$0xff] }
  0x2b   :  { %195 = vmatmul.mubr.msk.bf16.vlgmr.msra.gmra.mrb[0].mxu0 %vm57_vm2, %v55_v6  ;;  %201 = vmatmul.mubr.msk.bf16.vlgmr.msra.gmra.mrb[0].mxu1 %vm111_vm3, %v51_v7 }
  0xfe   :  { %v99_v8 = vpop.f32.mrb[0].mxu0  ;;  %v149_v10 = vpop.f32.mrb[0].mxu1 }
  0xff   :  { %v196_v9 = vpop.f32.mrb[1].mxu0  ;;  %v150_v12 = vadd.f32 %v149_v10, %v99_v8  ;;  %v202_v14 = vpop.f32.mrb[1].mxu1 }
 0x100   :  { %v102_v13 = vpop.f32.mrb[2].mxu0  ;;  %v152_v16 = vpop.f32.mrb[2].mxu1 }
 0x101   :  { %v197_v15 = vpop.f32.mrb[3].mxu0  ;;  %v162_v17 = vadd.f32 %v186_v11, %v150_v12  ;;  %v203_v18 = vpop.f32.mrb[3].mxu1 }
 0x103   :  { %v163_v20 = vmax.f32 %v162_v17, 0.0 }
 0x105   :  { %v171_v21 = vmul.f32 %v187_v19, %v163_v20 }
 0x107   :  { %v172_v22 = vsel %vm61_vm1, %v171_v21, 0.0 }
 0x108   :  { %173 = vadd.xlane.f32.xlu0 %v172_v22 }
 0x195   :  { %v174_v23 = vpop.xlane.xlu0 %173 }
 0x196   :  { %176 = vst.msk [vmem:[%s354_s6] sm:$0x3] %vm175_vm4, %v174_v23 }
 0x197   :  { %181 = vsyncpa [#allocation3], 1 }
 0x198   :  { %182 = vsyncpa [#allocation5], 1 }

</bundles_post_ra>
